<compile_context>
chip_gen: v7x
topology: tpu7x:2x2x1
jax: 0.10.0
libtpu: 0.0.40
codegen_flags: <defaults>
</compile_context>

<pallas_src>
from collections import deque

import numpy as np
import jax
import jax.numpy as jnp
from jax import lax
from jax.experimental import pallas as pl
from jax.experimental.pallas import tpu as pltpu


def _round_up(x, m):
    return ((x + m - 1) // m) * m


# ----------------------------------------------------------------------------
# Kernel: spatial_encodings^T = emb^T contracted with one-hot counts
#   counts[t, j] = #{ b : spatial_types[b, j] == t }          (VPU compares, int32)
#   pe_t[d, j]   = sum_t emb_t[d, t] * counts[t, j]           (MXU, lane-dense out)
# Values of spatial_types outside [0, T1) would silently contribute zero; BFS
# guarantees the range here (matches the Embedding-lookup semantics).
# ----------------------------------------------------------------------------
def _sdpe_kernel(st_ref, embt_ref, pe_ref):
    B, tile_n = st_ref.shape           # (batch_size, tile of N)
    T1 = embt_ref.shape[1]             # padded (num_spatial_types + 1)
    st = st_ref[...]                   # (B, tile_n) int32

    iota_t = lax.broadcasted_iota(jnp.int32, (T1, tile_n), 0)   # row index = emb id

    # Integer one-hot accumulation; init from the first compare, convert once.
    counts_i = (st[0:1, :] == iota_t).astype(jnp.int32)
    for b in range(1, B):              # B is small & static -> unrolled
        counts_i = counts_i + (st[b:b + 1, :] == iota_t).astype(jnp.int32)
    counts = counts_i.astype(jnp.float32)

    # (dim_pe, T1) x (T1, tile_n) contracted over T1 -> (dim_pe, tile_n)
    # Result lands lane-dense (last dim = tile_n, multiple of 128): unmasked stores.
    pe_t = lax.dot_general(
        embt_ref[...], counts,
        dimension_numbers=(((1,), (0,)), ((), ())),
        preferred_element_type=jnp.float32,
    )
    pe_ref[...] = pe_t.astype(pe_ref.dtype)


def prepare_spatial_embedding(emb):
    """Parameter-init-time prep: (T1, dim_pe) -> (dim_pe, T1_pad), T1_pad mult of 8.

    Padded rows are all-zero and never matched by the one-hot counts, so they
    contribute nothing to the result.
    """
    T1, _ = emb.shape
    T1_pad = _round_up(T1, 8)
    if T1_pad != T1:
        emb = jnp.pad(emb, ((0, T1_pad - T1), (0, 0)))
    return jnp.transpose(emb)          # (dim_pe, T1_pad)


def spatial_encoding_sum_t(spatial_types_np, emb_t, *, tile_n=512):
    """spatial_types_np: host numpy (B, N) int32; emb_t: (dim_pe, T1_pad) f32.

    Returns the TRANSPOSED position encodings (dim_pe, N_pad) f32; callers slice
    columns [0, N) per node type (padded tail columns are never consumed).
    """
    B, N = spatial_types_np.shape
    dim_pe, T1_pad = emb_t.shape

    # Tile choice: big (<=512) for HBM efficiency, but capped at ceil(N/2) rounded
    # to 128 so the grid has >=2 steps -> both v7x TensorCores get work.
    tile = min(tile_n, max(128, _round_up(pl.cdiv(N, 2), 128)))
    N_pad = _round_up(N, tile)
    if N_pad != N:
        # Host-side tail pad with a valid id (0); padded output columns are never read.
        spatial_types_np = np.pad(spatial_types_np, ((0, 0), (0, N_pad - N)),
                                  constant_values=0)
    spatial_types = jnp.asarray(spatial_types_np, dtype=jnp.int32)

    grid = (N_pad // tile,)
    pe_t = pl.pallas_call(
        _sdpe_kernel,
        out_shape=jax.ShapeDtypeStruct((dim_pe, N_pad), jnp.float32),
        grid=grid,
        in_specs=[
            pl.BlockSpec((B, tile), lambda n: (0, n)),
            pl.BlockSpec((dim_pe, T1_pad), lambda n: (0, 0)),
        ],
        out_specs=pl.BlockSpec((dim_pe, tile), lambda n: (0, n)),
        compiler_params=pltpu.CompilerParams(
            dimension_semantics=("parallel",)),
        cost_estimate=pl.CostEstimate(
            flops=2 * N_pad * T1_pad * dim_pe,
            transcendentals=0,
            bytes_accessed=4 * (B * N_pad + N_pad * dim_pe + T1_pad * dim_pe)),
    )(spatial_types, emb_t)
    return pe_t                         # (dim_pe, N_pad), sliced by the consumer


# ----------------------------------------------------------------------------
# Graph preprocessing (the networkx part of the original forward).
# TODO(synk): BFS shortest-path over a graph has no clean Pallas equivalent;
#             done here in plain Python exactly like nx.single_source_shortest_path.
# ----------------------------------------------------------------------------
def bfs_spatial_types(adj, batch_size, num_spatial_types):
    N = len(adj)
    st = np.full((batch_size, N), num_spatial_types, dtype=np.int32)
    for src in range(batch_size):
        dist = {src: 0}
        st[src, src] = 0
        q = deque([src])
        while q:
            u = q.popleft()
            if dist[u] >= num_spatial_types:
                continue
            for v in adj[u]:
                if v not in dist:
                    dist[v] = dist[u] + 1
                    st[src, v] = dist[v]
                    q.append(v)
    return st


def build_adjacency(N):
    """Deterministic directed homogeneous graph (ring + chords)."""
    adj = [[] for _ in range(N)]
    for i in range(N):
        adj[i].append((i + 1) % N)
        if i % 3 == 0:
            adj[i].append((i + 13) % N)
        if i % 7 == 0:
            adj[i].append((i + 37) % N)
    return adj


# ----------------------------------------------------------------------------
# Full forward (module semantics, expand_x=False)
# ----------------------------------------------------------------------------
def hetero_sdpe_forward(x_dict, num_nodes_dict, adj, emb_t, batch_size,
                        num_spatial_types):
    # 1. spatial distances from the first `batch_size` homogeneous nodes (host numpy)
    st_np = bfs_spatial_types(adj, batch_size, num_spatial_types)   # (B, N) int32

    # 2. Pallas kernel: sum over batch of embedding lookups -> (dim_pe, N_pad),
    #    kept transposed/lane-dense; no whole-array transpose afterwards.
    pe_t = spatial_encoding_sum_t(st_np, emb_t)

    # 3./4. split PE per node type (contiguous in homogeneous order) and concat
    #       with x.  Only the tiny per-type column slices are transposed; XLA fuses
    #       this data movement into the concat.
    out = {}
    offset = 0
    for node_type, n_nodes in num_nodes_dict.items():
        pe_k = pe_t[:, offset:offset + n_nodes].T                   # (n_nodes, dim_pe)
        x_k = x_dict[node_type]
        out[node_type] = jnp.concatenate([x_k, pe_k.astype(x_k.dtype)], axis=1)
        offset += n_nodes
    return out, st_np, pe_t


if __name__ == "__main__":
    # --- configuration (matches cfg.posenc_Hetero_SDPE.*) -------------------
    num_spatial_types = 16
    dim_pe = 16
    batch_size = 4                                  # batch_size of the task entity
    num_nodes_dict = {"paper": 96, "author": 160}   # task entity = "paper" (first type)
    dim_in_dict = {"paper": 32, "author": 24}
    N = sum(num_nodes_dict.values())                # homogeneous node count = 256

    # --- deterministic parameters & inputs -----------------------------------
    key = jax.random.PRNGKey(0)
    k_emb, k_paper, k_author = jax.random.split(key, 3)
    # Embedding(num_spatial_types + 1, dim_pe), weight ~ N(0, 0.02)
    emb = 0.02 * jax.random.normal(k_emb, (num_spatial_types + 1, dim_pe),
                                   dtype=jnp.float32)
    # Parameter-init-time prep (done once, not per forward): pad + transpose.
    emb_t = prepare_spatial_embedding(emb)          # (dim_pe, T1_pad)

    x_dict = {
        "paper": jax.random.normal(k_paper, (num_nodes_dict["paper"],
                                             dim_in_dict["paper"]), jnp.float32),
        "author": jax.random.normal(k_author, (num_nodes_dict["author"],
                                               dim_in_dict["author"]), jnp.float32),
    }
    adj = build_adjacency(N)

    # --- run ------------------------------------------------------------------
    out, st_np, pe_t = hetero_sdpe_forward(
        x_dict, num_nodes_dict, adj, emb_t, batch_size, num_spatial_types)
    jax.block_until_ready(out)

    # --- sanity check against a plain-JAX reference --------------------------
    spatial_types = jnp.asarray(st_np, dtype=jnp.int32)
    ref_pe = jnp.sum(emb[spatial_types], axis=0)                    # (N, dim_pe)
    np.testing.assert_allclose(np.asarray(pe_t[:, :N].T), np.asarray(ref_pe),
                               rtol=1e-5, atol=1e-5)
    offset = 0
    for node_type, n_nodes in num_nodes_dict.items():
        ref_out = jnp.concatenate(
            [x_dict[node_type], ref_pe[offset:offset + n_nodes]], axis=1)
        np.testing.assert_allclose(np.asarray(out[node_type]), np.asarray(ref_out),
                                   rtol=1e-5, atol=1e-5)
        assert out[node_type].shape == (n_nodes, dim_in_dict[node_type] + dim_pe)
        offset += n_nodes

    print("KERNEL_OK")
</pallas_src>

<mosaic_0001>
module attributes {stable_mosaic.version = 11 : i64} {
  func.func @_sdpe_kernel(%arg0: i32, %arg1: memref<4x128xi32, #tpu.memory_space<vmem>>, %arg2: memref<16x24xf32, #tpu.memory_space<vmem>>, %arg3: memref<16x128xf32, #tpu.memory_space<vmem>>) attributes {dimension_semantics = [#tpu.dimension_semantics<parallel>], iteration_bounds = array<i64: 2>, scalar_prefetch = 0 : i64, scratch_operands = 0 : i64, tpu.core_type = #tpu.core_type<tc>, window_params = [{transform_indices = @transform_0, window_bounds = array<i64: 4, 128>}, {pipeline_mode = #tpu.pipeline_mode<synchronous>, transform_indices = @transform_1, window_bounds = array<i64: 16, 24>}, {transform_indices = @transform_2, window_bounds = array<i64: 16, 128>}]} {
    %c0 = arith.constant 0 : index
    %c0_0 = arith.constant 0 : index
    %0 = vector.load %arg1[%c0, %c0_0] : memref<4x128xi32, #tpu.memory_space<vmem>>, vector<4x128xi32>
    %1 = tpu.iota {dimensions = array<i32: 0>} : vector<24x128xi32>
    %2 = vector.extract_strided_slice %0 {offsets = [0, 0], sizes = [1, 128], strides = [1, 1]} : vector<4x128xi32> to vector<1x128xi32>
    %3 = vector.broadcast %2 : vector<1x128xi32> to vector<24x128xi32>
    %4 = arith.cmpi eq, %3, %1 : vector<24x128xi32>
    %5 = arith.extui %4 : vector<24x128xi1> to vector<24x128xi32>
    %6 = vector.extract_strided_slice %0 {offsets = [1, 0], sizes = [1, 128], strides = [1, 1]} : vector<4x128xi32> to vector<1x128xi32>
    %7 = vector.broadcast %6 : vector<1x128xi32> to vector<24x128xi32>
    %8 = arith.cmpi eq, %7, %1 : vector<24x128xi32>
    %9 = arith.extui %8 : vector<24x128xi1> to vector<24x128xi32>
    %10 = arith.addi %5, %9 : vector<24x128xi32>
    %11 = vector.extract_strided_slice %0 {offsets = [2, 0], sizes = [1, 128], strides = [1, 1]} : vector<4x128xi32> to vector<1x128xi32>
    %12 = vector.broadcast %11 : vector<1x128xi32> to vector<24x128xi32>
    %13 = arith.cmpi eq, %12, %1 : vector<24x128xi32>
    %14 = arith.extui %13 : vector<24x128xi1> to vector<24x128xi32>
    %15 = arith.addi %10, %14 : vector<24x128xi32>
    %16 = vector.extract_strided_slice %0 {offsets = [3, 0], sizes = [1, 128], strides = [1, 1]} : vector<4x128xi32> to vector<1x128xi32>
    %17 = vector.broadcast %16 : vector<1x128xi32> to vector<24x128xi32>
    %18 = arith.cmpi eq, %17, %1 : vector<24x128xi32>
    %19 = arith.extui %18 : vector<24x128xi1> to vector<24x128xi32>
    %20 = arith.addi %15, %19 : vector<24x128xi32>
    %21 = arith.sitofp %20 : vector<24x128xi32> to vector<24x128xf32>
    %c0_1 = arith.constant 0 : index
    %c0_2 = arith.constant 0 : index
    %22 = vector.load %arg2[%c0_1, %c0_2] : memref<16x24xf32, #tpu.memory_space<vmem>>, vector<16x24xf32>
    %cst = arith.constant dense<0.000000e+00> : vector<16x128xf32>
    %23 = tpu.matmul %22, %21, %cst {dimension_numbers = #tpu.dot_dimension_numbers<[1], [0], [0], [1], [0, 0, 1, 1], [], []>} : vector<16x24xf32>, vector<24x128xf32>, vector<16x128xf32> -> vector<16x128xf32>
    %c0_3 = arith.constant 0 : index
    %c0_4 = arith.constant 0 : index
    %24 = vector.load %arg3[%c0_3, %c0_4] : memref<16x128xf32, #tpu.memory_space<vmem>>, vector<16x128xf32>
    tpu.vector_store %arg3[%c0_3, %c0_4], %23 {strides = array<i32>} : memref<16x128xf32, #tpu.memory_space<vmem>>, vector<16x128xf32>,
    return
  }
  func.func @transform_0(%arg0: i32) -> (i32, i32) {
    %c0_i32 = arith.constant 0 : i32
    %c0_i32_0 = arith.constant 0 : i32
    return %c0_i32, %arg0 : i32, i32
  }
  func.func @transform_1(%arg0: i32) -> (i32, i32) {
    %c0_i32 = arith.constant 0 : i32
    %c0_i32_0 = arith.constant 0 : i32
    %c0_i32_1 = arith.constant 0 : i32
    return %c0_i32, %c0_i32_0 : i32, i32
  }
  func.func @transform_2(%arg0: i32) -> (i32, i32) {
    %c0_i32 = arith.constant 0 : i32
    %c0_i32_0 = arith.constant 0 : i32
    return %c0_i32, %arg0 : i32, i32
  }
}

</mosaic_0001>

<bundles_post_ra>
// kernel: tpu_custom_call.1
= control target key start
LH: loop header
LB: loop body
LE: loop exit
PB: predicated region body
PF: predicated region fallthrough
CT: control target
= control target key end

     0   :  { %7 = vsyncpa [#allocation3], 0  ;;  %s865_s0 = inlined_call_operand.hbm [shape: s32[4,256], index: 0, kind: input, shape index: {}]   ;;  %s866_s1 = inlined_call_operand.hbm [shape: f32[16,24], index: 1, kind: input, shape index: {}]   ;;  %s867_s2 = inlined_call_operand.hbm [shape: f32[16,256], index: 2, kind: output, shape index: {}]  }
   0x1   :  { %9 = vsyncpa [#allocation3 + $0x1], 0 }
   0x2   :  { %10 = vsyncpa [#allocation6], 0 }
   0x3   :  { %11 = vsyncpa [#allocation4], 0 }
   0x4   :  { %13 = vsyncpa [#allocation4 + $0x1], 0  ;;  %s664_s9 = smov 0   ;;  %s666_s10 = smov 0  }
   0x5   :  { %s668_s11 = smov 0   ;;  %s670_s12 = smov 0  }
   0x6 LB: > { %s685_s13 = sadd.s32 4294967295, %s638_s12   ;;  %s413_s14 = sadd.s32 4294967294, %s638_s12   ;;  %s638_s12 = sphi %s670_s12, %s887_s12   ;;  %s634_s11 = sphi %s668_s11, %s886_s11   ;;  %s630_s10 = sphi %s666_s10, %s885_s10   ;;  %s626_s9 = sphi %s664_s9, %s884_s9  }
   0x7   : > { %p39_p0 = scmp.ne.s32.totalorder %s630_s10, %s626_s9  ;;  %p868_p1 = scmp.eq.s32.totalorder %s685_s13, 0 }
   0x8   : > { %p90_p3 = scmp.eq.s32.totalorder %s413_s14, 1  ;;  %p414_p5 = scmp.ge.s32.totalorder %s638_s12, 1 }
   0x9   : > { %p694_p4 = por %p868_p1, %p39_p0  ;;  %p97_p7 = scmp.lt.s32.totalorder %s638_s12, 3 }
   0xa   : > { %p699_p6 = por %p90_p3, %p39_p0  ;;  %s640_s18 = smov [#allocation5]  }
   0xb   : > { %s871_s15 = scalar_select %p694_p4, 1, 0 }
   0xc   : > { %s872_s16 = scalar_select %p699_p6, 1, 0 }
   0xd   : > { %p704_p8 = pnand %p414_p5, %p97_p7  ;;  %s109_s19 = sshll.u32 %s640_s18, 4  ;;  %s708_s19 = int_to_ptr.vmem [resolvable:$true] %s109_s19 }
   0xe   : > { %s720_s21 = sadd.s32 1, %s638_s12   ;;  %s26_s22 = sadd.s32 1, %s634_s11 }
   0xf   : > { %s873_s17 = scalar_select %p704_p8, 1, 0 }
  0x10   : > { %p455_p9 = pneg %p704_p8  ;;  %s23_s23 = ssub.s32 %s638_s12, %s720_s21 }
  0x11   : > { %s510_s26 = scalar_lea.hbm %s866_s1, 256 }
  0x12   : > { %p715_p11 = pnand %p455_p9, %p868_p1  ;;  %p511_p12 = scmp.ne.s32.totalorder %s866_s1, %s510_s26 }
  0x13   : > { %p517_p5 = scmp.lt.u32.totalorder %s510_s26, %s866_s1 }
  0x14   : > { %p512_p13 = pneg %p715_p11 }
  0x16   : > { %p513_p0 = pnand %p512_p13, %p511_p12 }
  0x18   : > { %p514_p3 = pneg %p513_p0 }
  0x1a   : > { %p519_p7 = pnand %p517_p5, %p514_p3 }
  0x1c   : > { %522 = shalt.err (!%p519_p7)
}
  0x1d   : > { %s523_s3 = scalar_lea.vmem %s708_s19, 256  ;;  %p531_p2 = scmp.lt.s32.totalorder %s708_s19, %s708_s19 }
  0x1e   : > { %p524_p9 = scmp.ne.s32.totalorder %s708_s19, %s523_s3  ;;  %p532_p6 = scmp.lt.s32.totalorder %s523_s3, %s523_s3 }
  0x20   : > { %p526_p10 = pnand %p524_p9, %p512_p13  ;;  %p533_p4 = por %p532_p6, %p531_p2 }
  0x22   : > { %p527_p1 = pneg %p526_p10 }
  0x24   : > { %p534_p8 = pnand %p533_p4, %p527_p1 }
  0x26   : > { %537 = shalt.err (!%p534_p8)
}
  0x27   : > { %s641_s4 = smov 128   ;;  %s642_s5 = smov 8  }
  0x28   : > { %458 = dma.hbm_to_vmem [thread:$0]  (!%p715_p11), %s866_s1, 256, %s708_s19, [#allocation6], %s641_s4, %s641_s4, %s642_s5  }
  0x29   : > { %p24_p2 = scmp.eq.s32.totalorder %s23_s23, 0  ;;  %p33_p1 = scmp.ne.s32.totalorder %s634_s11, %s630_s10 }
  0x2a   : > { %p34_p4 = scmp.eq.s32.totalorder %s638_s12, 0  ;;  %p468_p6 = scmp.lt.s32.totalorder %s638_s12, 2 }
  0x2b   : > { %s751_s8 = scalar_select %p24_p2, %s634_s11, %s26_s22  }
  0x2c   : > { %p35_p8 = por %p34_p4, %p33_p1  ;;  %p875_p10 = scmp.eq.s32.totalorder %s685_s13, 1 }
  0x2d   : > { %s123_s18 = sand.u32 1, %s634_s11   ;;  %s418_s24 = sshll.u32 %s638_s12, 6 }
  0x2e   : > { %p755_p12 = por %p875_p10, %p33_p1  ;;  %s417_s25 = sshll.u32 %s123_s18, 2 }
  0x2f   : > { %s764_s27 = scalar_lea.hbm %s865_s0, %s418_s24  ;;  %s127_s19 = scalar_lea.vmem [#allocation2], %s417_s25 }
  0x30   : > { %s134_s22 = sshll.u32 %s127_s19, 4  ;;  %p766_p11 = pnand %p468_p6, %p35_p8  ;;  %s770_s22 = int_to_ptr.vmem [resolvable:$true] %s134_s22 }
  0x31   : > { %s124_s28 = scalar_lea.sflag [#allocation3], %s123_s18  ;;  %s538_s29 = scalar_lea.hbm %s764_s27, 64 }
  0x32   : > { %p539_p13 = scmp.ne.s32.totalorder %s764_s27, %s538_s29  ;;  %p540_p0 = pneg %p766_p11 }
  0x33   : > { %s543_s4 = scalar_lea.hbm %s865_s0, 128  ;;  %p544_p7 = scmp.lt.u32.totalorder %s764_s27, %s865_s0 }
  0x34   : > { %p541_p3 = pnand %p540_p0, %p539_p13  ;;  %p545_p9 = scmp.lt.u32.totalorder %s543_s4, %s538_s29 }
  0x35   : > { %p547_p1 = scmp.lt.u32.totalorder %s538_s29, %s764_s27 }
  0x36   : > { %p542_p5 = pneg %p541_p3  ;;  %p546_p2 = por %p545_p9, %p544_p7 }
  0x38   : > { %p548_p4 = por %p547_p1, %p546_p2 }
  0x3a   : > { %p549_p6 = pnand %p548_p4, %p542_p5 }
  0x3c   : > { %552 = shalt.err (!%p549_p6)
}
  0x3d   : > { %s553_s7 = scalar_lea.vmem %s770_s22, 64  ;;  %s643_s18 = smov [#allocation2]  }
  0x3e   : > { %p554_p8 = scmp.ne.s32.totalorder %s770_s22, %s553_s7  ;;  %s558_s24 = sshll.u32 %s643_s18, 4  ;;  %s559_s24 = int_to_ptr.vmem [resolvable:$false] %s558_s24 }
  0x3f   : > { %s560_s25 = scalar_lea.vmem %s559_s24, 128  ;;  %p561_p3 = scmp.lt.s32.totalorder %s770_s22, %s559_s24 }
  0x40   : > { %p556_p10 = pnand %p554_p8, %p540_p0  ;;  %p562_p7 = scmp.lt.s32.totalorder %s560_s25, %s553_s7 }
  0x42   : > { %p557_p13 = pneg %p556_p10  ;;  %p563_p9 = por %p562_p7, %p561_p3 }
  0x44   : > { %p564_p2 = pnand %p563_p9, %p557_p13 }
  0x46   : > { %567 = shalt.err (!%p564_p2)
}
  0x47   : > { %462 = dma.hbm_to_vmem [thread:$0]  (!%p766_p11), %s764_s27, 64, %s770_s22, %s124_s28  }
  0x48   : > { %p878_p5 = scmp.ne.s32.totalorder %s873_s17, 0 }
  0x49   : > { %s800_s20 = sand.u32 (!%p878_p5), 1, %s630_s10   ;;  %p879_p0 = scmp.ne.s32.totalorder (!%p878_p5), %s871_s15, 0 }
  0x4a   : > { %143 = sbr.rel (%p878_p5) target bundleno = 340 (0x154), region = 28  ;;  %s420_s26 = sshll.u32 (!%p878_p5), %s800_s20, 2 }
  0x4b   : > { %s146_s19 = scalar_lea.sflag (!%p878_p5), [#allocation3], %s800_s20  ;;  %s149_s29 = scalar_lea.vmem (!%p878_p5), [#allocation2], %s420_s26 }
  0x51   : > { %613 = dma.done.wait (%p879_p0), %s146_s19, 64  }
  0x52   : > { %615 = vsyncadd (%p879_p0), %s146_s19, 4294967232  ;;  %p880_p1 = scmp.eq.s32.totalorder %s685_s13, 0 }
  0x54   : > { %617 = dma.done.wait (%p880_p1), [#allocation6], 256   ;;  %p881_p11 = pmov %p880_p1 }
  0x55   : > { %v175_v0 = vlaneseq  ;;  %vm233_vm0 = vcmask 195584   ;;  %v174_v7 = vld [vmem:[%s149_s29] sm:$0xf]  ;;  %v231_v8 = vld [vmem:[#allocation5] sm:$0xff]  ;;  %v644_v14 = vmov 0   ;;  %v232_v40 = vld [vmem:[#allocation5 + $0x8] sm:$0xff] }
  0x56   : > { %619 = vsyncadd (%p881_p11), [#allocation6], 4294967040  ;;  %440 = vmatprep.mubr.msk.f32.mxu0 %vm233_vm0, %v231_v8  ;;  %s422_s15 = sshll.u32 %s800_s20, 4  ;;  %s426_s22 = sshll.u32 %s685_s13, 7 }
  0x57   : > { %v176_v1 = vshrl.u32 %v175_v0, 7  ;;  %s173_s17 = scalar_lea.vmem [#allocation7], %s422_s15  ;;  %s821_s30 = scalar_lea.hbm %s867_s2, %s426_s22 }
  0x58   : > { %s330_s27 = sshll.u32 %s173_s17, 4  ;;  %s318_s3 = scalar_lea.sflag [#allocation4], %s800_s20  ;;  %s816_s27 = int_to_ptr.vmem [resolvable:$true] %s330_s27 }
  0x59   : > { %v181_v2 = vsub.s32 0, %v176_v1  ;;  %v191_v3 = vsub.s32 1, %v176_v1  ;;  %v204_v4 = vsub.s32 2, %v176_v1  ;;  %v217_v5 = vsub.s32 3, %v176_v1  ;;  %s568_s4 = scalar_lea.vmem %s816_s27, 256  ;;  %s645_s13 = smov [#allocation7]  }
  0x5a   : > { %v177_v6 = vadd.s32 8, %v176_v1  ;;  %v178_v13 = vadd.s32 16, %v176_v1  ;;  %p569_p4 = scmp.ne.s32.totalorder %s816_s27, %s568_s4  ;;  %s572_s5 = sshll.u32 %s645_s13, 4  ;;  %s573_s5 = int_to_ptr.vmem [resolvable:$false] %s572_s5 }
  0x5b   : > { %v182_v9 = vrot.slane %v174_v7, %v181_v2  ;;  %v192_v10 = vrot.slane %v174_v7, %v191_v3  ;;  %v205_v11 = vrot.slane %v174_v7, %v204_v4  ;;  %v218_v12 = vrot.slane %v174_v7, %v217_v5  ;;  %s574_s6 = scalar_lea.vmem %s573_s5, 512  ;;  %p575_p10 = scmp.lt.s32.totalorder %s816_s27, %s573_s5 }
  0x5c   : > { %p570_p6 = pnand %p569_p4, %p755_p12  ;;  %p576_p13 = scmp.lt.s32.totalorder %s574_s6, %s568_s4 }
  0x5d   : > { %vm183_vm1 = vcmp.eq.s32.totalorder %v182_v9, %v176_v1  ;;  %vm184_vm2 = vcmp.eq.s32.totalorder %v182_v9, %v177_v6  ;;  %vm193_vm3 = vcmp.eq.s32.totalorder %v192_v10, %v176_v1  ;;  %vm194_vm4 = vcmp.eq.s32.totalorder %v192_v10, %v177_v6 }
  0x5e   : > { %v186_v15 = vsel %vm183_vm1, 1, %v644_v14  ;;  %v187_v16 = vsel %vm184_vm2, 1, %v644_v14  ;;  %v196_v17 = vsel %vm193_vm3, 1, %v644_v14  ;;  %v197_v18 = vsel %vm194_vm4, 1, %v644_v14  ;;  %p571_p8 = pneg %p570_p6  ;;  %p577_p3 = por %p576_p13, %p575_p10 }
  0x5f   : > { %v199_v19 = vadd.s32 %v196_v17, %v186_v15  ;;  %v200_v20 = vadd.s32 %v197_v18, %v187_v16  ;;  %vm206_vm5 = vcmp.eq.s32.totalorder %v205_v11, %v176_v1  ;;  %vm207_vm6 = vcmp.eq.s32.totalorder %v205_v11, %v177_v6 }
  0x60   : > { %v209_v21 = vsel %vm206_vm5, 1, %v644_v14  ;;  %v210_v22 = vsel %vm207_vm6, 1, %v644_v14  ;;  %vm219_vm7 = vcmp.eq.s32.totalorder %v218_v12, %v176_v1  ;;  %vm220_vm8 = vcmp.eq.s32.totalorder %v218_v12, %v177_v6  ;;  %p578_p7 = pnand %p577_p3, %p571_p8 }
  0x61   : > { %v212_v23 = vadd.s32 %v209_v21, %v199_v19  ;;  %v213_v24 = vadd.s32 %v210_v22, %v200_v20  ;;  %v222_v25 = vsel %vm219_vm7, 1, %v644_v14  ;;  %v223_v26 = vsel %vm220_vm8, 1, %v644_v14 }
  0x62   : > { %vm185_vm9 = vcmp.eq.s32.totalorder %v182_v9, %v178_v13  ;;  %vm195_vm10 = vcmp.eq.s32.totalorder %v192_v10, %v178_v13  ;;  %vm208_vm11 = vcmp.eq.s32.totalorder %v205_v11, %v178_v13  ;;  %vm221_vm12 = vcmp.eq.s32.totalorder %v218_v12, %v178_v13 }
  0x63   : > { %v225_v27 = vadd.s32 %v222_v25, %v212_v23  ;;  %v226_v28 = vadd.s32 %v223_v26, %v213_v24  ;;  %v188_v29 = vsel %vm185_vm9, 1, %v644_v14  ;;  %v198_v30 = vsel %vm195_vm10, 1, %v644_v14 }
  0x64   : > { %v201_v31 = vadd.s32 %v198_v30, %v188_v29  ;;  %v211_v32 = vsel %vm208_vm11, 1, %v644_v14  ;;  %v224_v35 = vsel %vm221_vm12, 1, %v644_v14 }
  0x65   : > { %v228_v33 = vcvt.s32.f32 %v225_v27  ;;  %v229_v34 = vcvt.s32.f32 %v226_v28 }
  0x66   : > { %v214_v36 = vadd.s32 %v211_v32, %v201_v31 }
  0x67   : > { %v443_v37 = vpack.c.bf16 %v229_v34, %v228_v33 }
  0x68   : > { %v227_v38 = vadd.s32 %v224_v35, %v214_v36 }
  0x69   : > { %444 = vmatprep.subr.bf16.mxu0 %v443_v37 }
  0x6a   : > { %446 = vmatpush3.bf16.msra.mxu0 %v443_v37  ;;  %v230_v39 = vcvt.s32.f32 %v227_v38 }
  0x6c   : > { %438 = vmatprep.subr.mxu0 %v230_v39 }
  0x6e   : > { %439 = vmatpush3.msra.mxu0 %v230_v39 }
  0x6f   : > { %441 = vmatmul.mubr.msk.f32.vlgmr.msra.gmra.mrb[0].mxu0 %vm233_vm0, %v232_v40 }
 0x142   : > { %v442_v41 = vpop.f32.mrb[0].mxu0 }
 0x143   : > { %316 = vst [vmem:[%s173_s17 + $0x8] sm:$0xff] %v442_v41  ;;  %v306_v42 = vpop.f32.mrb[1].mxu0 }
 0x144   : > { %315 = vst [vmem:[%s173_s17] sm:$0xff] %v306_v42 }
 0x145   : > { %581 = shalt.err (!%p578_p7)
}
 0x146   : > { %s582_s7 = scalar_lea.hbm %s821_s30, 256  ;;  %s586_s25 = scalar_lea.hbm %s867_s2, 512 }
 0x147   : > { %p583_p9 = scmp.ne.s32.totalorder %s821_s30, %s582_s7  ;;  %p587_p0 = scmp.lt.u32.totalorder %s821_s30, %s867_s2 }
 0x148   : > { %p588_p1 = scmp.lt.u32.totalorder %s586_s25, %s582_s7  ;;  %p590_p4 = scmp.lt.u32.totalorder %s582_s7, %s821_s30 }
 0x149   : > { %p584_p2 = pnand %p583_p9, %p755_p12 }
 0x14a   : > { %p589_p11 = por %p588_p1, %p587_p0 }
 0x14b   : > { %p585_p5 = pneg %p584_p2 }
 0x14c   : > { %p591_p6 = por %p590_p4, %p589_p11 }
 0x14e   : > { %p592_p8 = pnand %p591_p6, %p585_p5 }
 0x150   : > { %595 = shalt.err (!%p592_p8)
}
 0x151   : > { %s646_s29 = smov 128   ;;  %s647_s15 = smov 256  }
 0x152   : > { %s648_s17 = smov 8  }
 0x153   : > { %453 = dma.vmem_to_hbm [thread:$0]  (%p755_p12), %s816_s27, 256, %s821_s30, %s318_s3, %s646_s29, %s647_s15, %s648_s17  }
 0x154 PF: > { %s345_s22 = sand.u32 1, %s626_s9   ;;  %p882_p10 = scmp.ne.s32.totalorder %s872_s16, 0 }
 0x155   : > { %p883_p13 = scmp.ge.s32.totalorder %s638_s12, 2  ;;  %s346_s23 = scalar_lea.sflag [#allocation4], %s345_s22 }
 0x157   : > { %p464_p3 = pnand %p883_p13, %p882_p10 }
 0x159   : > { %621 = dma.done.wait (!%p464_p3), %s346_s23, 256  }
 0x15a   : > { %623 = vsyncadd (!%p464_p3), %s346_s23, 4294967040  ;;  %p16_p7 = scmp.ge.s32.totalorder %s720_s21, 4   ;;  %s884_s9 = smov %s630_s10 }
 0x15b   : > { %s885_s10 = smov %s634_s11  ;;  %s886_s11 = smov %s751_s8 }
 0x15c   : > { %s887_s12 = smov %s720_s21  ;;  %18 = sbr.rel (!%p16_p7) target bundleno = 6 (0x6), region = 77 }
 0x163   :  { %351 = vsyncpa [#allocation3], 1 }
 0x164   :  { %353 = vsyncpa [#allocation3 + $0x1], 1 }
 0x165   :  { %354 = vsyncpa [#allocation6], 1 }
 0x166   :  { %355 = vsyncpa [#allocation4], 1 }
 0x167   :  { %357 = vsyncpa [#allocation4 + $0x1], 1 }

</bundles_post_ra>
